<compile_context>
chip_gen: v7x
topology: tpu7x:2x2x1
jax: 0.10.0
libtpu: 0.0.40
codegen_flags: <defaults>
</compile_context>

<pallas_src>
import jax
import jax.numpy as jnp
from jax.experimental import pallas as pl
from jax.experimental.pallas import tpu as pltpu


# ----------------------------------------------------------------------------
# pltpu.roll rotation-direction self-check (cached; primed outside jit).
# ----------------------------------------------------------------------------
_ROLL_MATCHES_JNP = None


def _roll_matches_jnp_roll():
    """True iff pltpu.roll(x, s, axis) == jnp.roll(x, s, axis) on this backend.

    Evaluated once with a tiny probe kernel (first call must happen outside a
    jit trace -- see __main__); afterwards only the cached Python bool is
    used, so the main kernel's shift amounts stay static ints."""
    global _ROLL_MATCHES_JNP
    if _ROLL_MATCHES_JNP is None:
        def probe(x_ref, o_ref):
            o_ref[...] = pltpu.roll(x_ref[...], 1, axis=1)

        x = jnp.tile(jnp.arange(128, dtype=jnp.float32)[None, :], (8, 1))
        y = pl.pallas_call(
            probe, out_shape=jax.ShapeDtypeStruct((8, 128), jnp.float32))(x)
        _ROLL_MATCHES_JNP = bool(float(jax.device_get(y)[0, 0]) == 127.0)
    return _ROLL_MATCHES_JNP


# ----------------------------------------------------------------------------
# Fused kernel: entire batch in one grid step, layout (C, B*H*W).
# ----------------------------------------------------------------------------
def _make_kernel(C, amt_tap, amt_l, amt_r, amt_u, amt_d):
    def kernel(x1_ref, x2_ref, coef_ref, mask_ref,
               w3_ref, b3_ref, w1_ref, b1_ref, o_ref, stage_ref):
        roll = lambda v, a: pltpu.roll(v, a, axis=1)

        cf = coef_ref[...]                       # (8, L) interpolation weights
        al, alm = cf[0:1], cf[1:2]               # row, even phase
        be, bem = cf[2:3], cf[3:4]               # row, odd  phase
        ga, gam = cf[4:5], cf[5:6]               # col, even phase
        de, dem = cf[6:7], cf[7:8]               # col, odd  phase

        def max_up(v):
            # maxpool2x2( upsample_2x_bilinear_align_corners(v) ) -- exact.
            # Boundary weights are exactly 0, so wrapped roll values vanish.
            u0 = gam * roll(v, amt_l) + ga * v           # col phase 0: (j-1, j)
            u1 = dem * v + de * roll(v, amt_r)           # col phase 1: (j, j+1)
            m = alm * roll(u0, amt_u) + al * u0          # (even row, even col)
            m = jnp.maximum(m, bem * u0 + be * roll(u0, amt_d))
            m = jnp.maximum(m, alm * roll(u1, amt_u) + al * u1)
            m = jnp.maximum(m, bem * u1 + be * roll(u1, amt_d))
            return m

        # f = f1 * f2 ; conv3x3(pad=1) with folded bias/BN, then ReLU.
        # Stage the 9 masked shifted copies and do ONE (C,9C)@(9C,L) matmul.
        f = x1_ref[...] * x2_ref[...]
        mk = mask_ref[...]                               # (9, L) border masks
        for t in range(9):
            if t == 4:
                stage_ref[pl.ds(t * C, C), :] = f        # centre tap
            else:
                stage_ref[pl.ds(t * C, C), :] = roll(f, amt_tap[t]) * mk[t:t + 1]
        acc = jnp.dot(w3_ref[...], stage_ref[...],
                      preferred_element_type=jnp.float32)
        fc = jax.nn.relu(acc + b3_ref[...])

        # maxpool(upsample(.)) x3, adds, conv1x1 with folded bias/BN, ReLU.
        fm = max_up(fc)
        g = max_up(fm + x1_ref[...]) + max_up(fm + x2_ref[...])
        z = jnp.dot(w1_ref[...], g, preferred_element_type=jnp.float32) + b1_ref[...]
        o_ref[...] = jax.nn.relu(z)

    return kernel


# ----------------------------------------------------------------------------
# Host-side constant builders (static given H, W, B).
# ----------------------------------------------------------------------------
def _make_mu_coeffs(H, W, B):
    """Per-pixel weights of the 4 phases of 2x align_corners bilinear
    upsampling, flattened over H*W and tiled over the batch lane blocks."""
    p = jnp.arange(H * W)
    row = (p // W).astype(jnp.float32)
    col = (p % W).astype(jnp.float32)
    alpha = 1.0 - row / (2 * H - 1)
    beta = (H - 1 - row) / (2 * H - 1)
    gamma = 1.0 - col / (2 * W - 1)
    delta = (W - 1 - col) / (2 * W - 1)
    c = jnp.stack([alpha, 1.0 - alpha, beta, 1.0 - beta,
                   gamma, 1.0 - gamma, delta, 1.0 - delta]).astype(jnp.float32)
    return jnp.tile(c, (1, B))                            # (8, B*HW)


def _make_tap_masks(H, W, B):
    """0/1 validity mask per conv3x3 tap (zero padding), tiled over batch."""
    p = jnp.arange(H * W)
    row, col = p // W, p % W
    rows = []
    for dy in (-1, 0, 1):
        for dx in (-1, 0, 1):
            ok = (row + dy >= 0) & (row + dy < H) & (col + dx >= 0) & (col + dx < W)
            rows.append(ok)
    m = jnp.stack(rows).astype(jnp.float32)               # (9, HW)
    return jnp.tile(m, (1, B))                             # (9, B*HW)


# ----------------------------------------------------------------------------
# Wrapper
# ----------------------------------------------------------------------------
def merge_pallas(f1, f2, p):
    B, C, H, W = f1.shape
    HW = H * W
    L = B * HW
    Cp = p['w1'].shape[0]

    # Batch folded onto the lane axis: (B, C, H, W) -> (C, B*H*W).
    x1 = jnp.transpose(f1, (1, 0, 2, 3)).reshape(C, L).astype(jnp.float32)
    x2 = jnp.transpose(f2, (1, 0, 2, 3)).reshape(C, L).astype(jnp.float32)

    # Fold inference-mode BN + bias into the conv weights (pure reassociation).
    w3f = p['w3'].astype(jnp.float32) * p['bn3_scale'][:, None, None, None]
    w3c = jnp.transpose(w3f, (0, 2, 3, 1)).reshape(C, 9 * C)   # (C, 9C), tap-major K
    b3f = (p['b3'] * p['bn3_scale'] + p['bn3_shift']).reshape(C, 1).astype(jnp.float32)
    w1f = p['w1'].astype(jnp.float32) * p['bn1_scale'][:, None]
    b1f = (p['b1'] * p['bn1_scale'] + p['bn1_shift']).reshape(Cp, 1).astype(jnp.float32)

    coefs = _make_mu_coeffs(H, W, B)                       # (8, L)
    masks = _make_tap_masks(H, W, B)                       # (9, L)

    # Static roll amounts for a (dy, dx) pixel shift on the flat lane axis.
    jnp_conv = _roll_matches_jnp_roll()

    def amt(dy, dx):
        d = dy * W + dx
        return (-d) % L if jnp_conv else d % L

    amt_tap = [amt(t // 3 - 1, t % 3 - 1) for t in range(9)]
    kernel = _make_kernel(C, amt_tap, amt(0, -1), amt(0, 1), amt(-1, 0), amt(1, 0))

    inputs = (x1, x2, coefs, masks, w3c, b3f, w1f, b1f)
    spec = lambda a: pl.BlockSpec(a.shape, lambda i: (0, 0))

    out = pl.pallas_call(
        kernel,
        out_shape=jax.ShapeDtypeStruct((Cp, L), jnp.float32),
        grid=(1,),
        in_specs=[spec(a) for a in inputs],
        out_specs=pl.BlockSpec((Cp, L), lambda i: (0, 0)),
        scratch_shapes=[pltpu.VMEM((9 * C, L), jnp.float32)],
    )(*inputs)

    return jnp.transpose(out.reshape(Cp, B, H, W), (1, 0, 2, 3))


# ----------------------------------------------------------------------------
# Pure-JAX reference (mirrors the PyTorch forward, NCHW) for validation.
# ----------------------------------------------------------------------------
def _upsample2x_align_corners(x):
    B, C, H, W = x.shape

    def interp(n):
        out = 2 * n
        src = jnp.arange(out, dtype=jnp.float32) * (n - 1) / (out - 1)
        lo = jnp.clip(jnp.floor(src).astype(jnp.int32), 0, n - 2)
        frac = src - lo.astype(jnp.float32)
        m = jnp.zeros((out, n), jnp.float32)
        m = m.at[jnp.arange(out), lo].add(1.0 - frac)
        m = m.at[jnp.arange(out), lo + 1].add(frac)
        return m

    hp = jax.lax.Precision.HIGHEST
    y = jnp.einsum('oh,bchw->bcow', interp(H), x, precision=hp)
    y = jnp.einsum('pw,bcow->bcop', interp(W), y, precision=hp)
    return y


def _maxpool2(x):
    B, C, H2, W2 = x.shape
    return x.reshape(B, C, H2 // 2, 2, W2 // 2, 2).max(axis=(3, 5))


def reference_forward(f1, f2, p):
    hp = jax.lax.Precision.HIGHEST
    f = f1 * f2
    z = jax.lax.conv_general_dilated(f, p['w3'], (1, 1), ((1, 1), (1, 1)),
                                     dimension_numbers=('NCHW', 'OIHW', 'NCHW'),
                                     precision=hp)
    z = z + p['b3'][None, :, None, None]
    z = jax.nn.relu(z * p['bn3_scale'][None, :, None, None]
                    + p['bn3_shift'][None, :, None, None])
    fm = _maxpool2(_upsample2x_align_corners(z))
    g = (_maxpool2(_upsample2x_align_corners(fm + f1))
         + _maxpool2(_upsample2x_align_corners(fm + f2)))
    out = jnp.einsum('oc,bchw->bohw', p['w1'], g, precision=hp) \
        + p['b1'][None, :, None, None]
    out = jax.nn.relu(out * p['bn1_scale'][None, :, None, None]
                      + p['bn1_shift'][None, :, None, None])
    return out


# ----------------------------------------------------------------------------
# Deterministic parameter construction (shapes follow the module's __init__).
# ----------------------------------------------------------------------------
def make_params(C, Cp):
    keys = iter(jax.random.split(jax.random.PRNGKey(1234), 16))
    nrm = lambda shape, s=0.1: s * jax.random.normal(next(keys), shape, jnp.float32)

    def bn_fold(n):      # inference-mode BN folded to per-channel scale/shift
        gamma = 1.0 + 0.1 * jax.random.normal(next(keys), (n,), jnp.float32)
        beta = 0.1 * jax.random.normal(next(keys), (n,), jnp.float32)
        mean = 0.1 * jax.random.normal(next(keys), (n,), jnp.float32)
        var = 1.0 + 0.1 * jnp.abs(jax.random.normal(next(keys), (n,), jnp.float32))
        scale = gamma * jax.lax.rsqrt(var + 1e-5)
        return scale, beta - mean * scale

    p = {}
    p['w3'], p['b3'] = nrm((C, C, 3, 3)), nrm((C,))          # conv3x3 (C -> C)
    p['bn3_scale'], p['bn3_shift'] = bn_fold(C)
    p['w1'], p['b1'] = nrm((Cp, C)), nrm((Cp,))              # conv1x1 (C -> plane_dim)
    p['bn1_scale'], p['bn1_shift'] = bn_fold(Cp)
    return p


if __name__ == "__main__":
    B, C, Cp = 2, 32, 16          # in_channel=32, plane_dim=16
    H = W = 16                    # B*H*W = 512 -> lane-dense

    k1, k2 = jax.random.split(jax.random.PRNGKey(0))
    f1 = jax.random.normal(k1, (B, C, H, W), jnp.float32)
    f2 = jax.random.normal(k2, (B, C, H, W), jnp.float32)
    params = make_params(C, Cp)

    _roll_matches_jnp_roll()      # prime the roll-direction probe outside jit

    fwd = jax.jit(merge_pallas)
    out = jax.block_until_ready(fwd(f1, f2, params))
    ref = jax.block_until_ready(reference_forward(f1, f2, params))

    assert out.shape == (B, Cp, H, W), out.shape
    max_err = float(jnp.max(jnp.abs(out - ref)))
    if max_err > 5e-3:
        raise AssertionError(f"mismatch vs reference, max abs err = {max_err}")
    print("KERNEL_OK")
</pallas_src>

<mosaic_0001>
module attributes {stable_mosaic.version = 11 : i64} {
  func.func @probe(%arg0: memref<8x128xf32, #tpu.memory_space<vmem>>, %arg1: memref<8x128xf32, #tpu.memory_space<vmem>>) attributes {dimension_semantics = [], scalar_prefetch = 0 : i64, scratch_operands = 0 : i64, tpu.core_type = #tpu.core_type<tc>} {
    %c0 = arith.constant 0 : index
    %c0_0 = arith.constant 0 : index
    %0 = vector.load %arg0[%c0, %c0_0] : memref<8x128xf32, #tpu.memory_space<vmem>>, vector<8x128xf32>
    %c1_i32 = arith.constant 1 : i32
    %1 = tpu.dynamic_rotate %0 by %c1_i32 dim 1 : vector<8x128xf32>, i32 -> vector<8x128xf32>
    %c0_1 = arith.constant 0 : index
    %c0_2 = arith.constant 0 : index
    %2 = vector.load %arg1[%c0_1, %c0_2] : memref<8x128xf32, #tpu.memory_space<vmem>>, vector<8x128xf32>
    tpu.vector_store %arg1[%c0_1, %c0_2], %1 {strides = array<i32>} : memref<8x128xf32, #tpu.memory_space<vmem>>, vector<8x128xf32>,
    return
  }
}

</mosaic_0001>

<bundles_post_ra>
// kernel: tpu_custom_call.1
= control target key start
LH: loop header
LB: loop body
LE: loop exit
PB: predicated region body
PF: predicated region fallthrough
CT: control target
= control target key end

     0   :  { %6 = vsyncpa [#allocation3], 0  ;;  %s128_s0 = inlined_call_operand.hbm [shape: f32[8,128], index: 0, kind: input, shape index: {}]   ;;  %s129_s1 = inlined_call_operand.hbm [shape: f32[8,128], index: 1, kind: output, shape index: {}]  }
   0x1   :  { %7 = vsyncpa [#allocation4], 0  ;;  %s91_s6 = smov [#allocation2]   ;;  %s43_s10 = scalar_lea.hbm %s128_s0, 128 }
   0x2   :  { %s14_s7 = sshll.u32 %s91_s6, 4  ;;  %p44_p0 = scmp.ne.s32.totalorder %s128_s0, %s43_s10  ;;  %s15_s7 = int_to_ptr.vmem [resolvable:$true] %s14_s7 }
   0x3   :  { %p47_p1 = scmp.lt.u32.totalorder %s43_s10, %s128_s0 }
   0x5   :  { %p49_p2 = pnand %p47_p1, %p44_p0 }
   0x7   :  { %52 = shalt.err (!%p49_p2)
}
   0x8   :  { %s53_s15 = scalar_lea.vmem %s15_s7, 128  ;;  %p58_p4 = scmp.lt.s32.totalorder %s15_s7, %s15_s7 }
   0x9   :  { %p54_p3 = scmp.ne.s32.totalorder %s15_s7, %s53_s15  ;;  %p59_p5 = scmp.lt.s32.totalorder %s53_s15, %s53_s15 }
   0xb   :  { %p60_p6 = por %p59_p5, %p58_p4 }
   0xd   :  { %p61_p7 = pnand %p60_p6, %p54_p3 }
   0xf   :  { %64 = shalt.err (!%p61_p7)
}
  0x10   :  { %17 = dma.hbm_to_vmem [thread:$0]  %s128_s0, 128, %s15_s7, [#allocation3]  }
  0x11   :  { %87 = dma.done.wait [#allocation3], 128  }
  0x12   :  { %88 = vsyncadd [#allocation3], 4294967168  ;;  %v21_v0 = vld [vmem:[#allocation2] sm:$0xff]  ;;  %s92_s18 = smov 1   ;;  %s93_s19 = smov [#allocation5]  }
  0x13   :  { %22 = vrot.lane.b32.xlu0 %v21_v0, %s92_s18  ;;  %s31_s20 = sshll.u32 %s93_s19, 4  ;;  %s32_s20 = int_to_ptr.vmem [resolvable:$true] %s31_s20 }
  0x14   :  { %s65_s21 = scalar_lea.vmem %s32_s20, 128  ;;  %p70_p9 = scmp.lt.s32.totalorder %s32_s20, %s32_s20 }
  0x15   :  { %p66_p8 = scmp.ne.s32.totalorder %s32_s20, %s65_s21  ;;  %p71_p10 = scmp.lt.s32.totalorder %s65_s21, %s65_s21 }
  0x17   :  { %p72_p11 = por %p71_p10, %p70_p9 }
  0x19   :  { %p73_p12 = pnand %p72_p11, %p66_p8 }
  0x85   :  { %v23_v1 = vpop.permute.xlu0 %22 }
  0x86   :  { %24 = vst [vmem:[#allocation5] sm:$0xff] %v23_v1 }
  0x87   :  { %76 = shalt.err (!%p73_p12)
}
  0x88   :  { %s77_s0 = scalar_lea.hbm %s129_s1, 128 }
  0x89   :  { %p78_p13 = scmp.ne.s32.totalorder %s129_s1, %s77_s0  ;;  %p81_p0 = scmp.lt.u32.totalorder %s77_s0, %s129_s1 }
  0x8b   :  { %p83_p1 = pnand %p81_p0, %p78_p13 }
  0x8d   :  { %86 = shalt.err (!%p83_p1)
}
  0x8e   :  { %34 = dma.vmem_to_hbm [thread:$0]  %s32_s20, 128, %s129_s1, [#allocation4]  }
  0x8f   :  { %89 = dma.done.wait [#allocation4], 128  }
  0x90   :  { %90 = vsyncadd [#allocation4], 4294967168 }
  0x91   :  { %38 = vsyncpa [#allocation3], 1 }
  0x92   :  { %39 = vsyncpa [#allocation4], 1 }

</bundles_post_ra>
